<compile_context>
chip_gen: v7x
topology: tpu7x:2x2x1
jax: 0.10.0
libtpu: 0.0.40
codegen_flags: <defaults>
</compile_context>

<pallas_src>
import functools
import math

import jax
import jax.numpy as jnp
from jax.experimental import pallas as pl
from jax.experimental.pallas import tpu as pltpu

VMEM_SPEC = pl.BlockSpec(memory_space=pltpu.MemorySpace.VMEM)
SMEM_SPEC = pl.BlockSpec(memory_space=pltpu.MemorySpace.SMEM)

MXU_DTYPE = jnp.bfloat16  # matmul operand dtype; accumulation stays f32


def _mm(a, b):
    """MXU matmul with bf16 operands and f32 accumulation."""
    return jnp.dot(a.astype(MXU_DTYPE), b.astype(MXU_DTYPE),
                   preferred_element_type=jnp.float32)


# ------------------------------------------------------------------ fused input + kqv kernel
def _in_kqv_kernel(xT_ref, w_in_ref, b_in_ref, w_kqv_ref, b_kqv_ref, h_ref, kqv_ref):
    # h = relu(x.T @ W_in + b_in)   (reference quirk: Linear(num_nodes -> hidden) applied to x.T)
    h = jnp.maximum(_mm(xT_ref[...], w_in_ref[...]) + b_in_ref[...], 0.0)
    h_ref[...] = h
    # fused kqv projection
    kqv_ref[...] = _mm(h, w_kqv_ref[...]) + b_kqv_ref[...]


def in_kqv(xT, w_in, b_in, w_kqv, b_kqv):
    C = xT.shape[0]
    return pl.pallas_call(
        _in_kqv_kernel,
        out_shape=(jax.ShapeDtypeStruct((C, w_in.shape[1]), jnp.float32),
                   jax.ShapeDtypeStruct((C, w_kqv.shape[1]), jnp.float32)),
        in_specs=[VMEM_SPEC] * 5,
        out_specs=(VMEM_SPEC, VMEM_SPEC),
    )(xT, w_in, b_in, w_kqv, b_kqv)


# ------------------------------------------------------------------ grouped typed (k_rel/v_rel) kernel
def block_diag_rel_weights(w, *, heads, num_et, head_dim):
    """[heads*num_et, D, D] (type id = h*num_et + et) -> per-edge-type block-diagonal [num_et, F, F]."""
    D = head_dim
    F = heads * D
    out = jnp.zeros((num_et, F, F), jnp.float32)
    for et in range(num_et):          # static, trace time
        for h in range(heads):
            out = out.at[et, h * D:(h + 1) * D, h * D:(h + 1) * D].set(w[h * num_et + et])
    return out


def _rel_kernel(k_ref, v_ref, wk_ref, wv_ref, ok_ref, ov_ref, *, groups):
    # Rows are contiguous per edge-type block (static), heads are contiguous lane slices and
    # the per-head weights were pre-fused into one block-diagonal [F, F] matrix per edge type
    # -> a single dense MXU matmul per (edge type) group for k and one for v.
    for (start, count, et) in groups:        # static
        ok_ref[start:start + count, :] = _mm(k_ref[start:start + count, :], wk_ref[et])
        ov_ref[start:start + count, :] = _mm(v_ref[start:start + count, :], wv_ref[et])


def rel_transform(k_cat, v_cat, wk_bd, wv_bd, *, groups):
    Ns, F = k_cat.shape
    kern = functools.partial(_rel_kernel, groups=tuple(groups))
    return pl.pallas_call(
        kern,
        out_shape=(jax.ShapeDtypeStruct((Ns, F), jnp.float32),
                   jax.ShapeDtypeStruct((Ns, F), jnp.float32)),
        in_specs=[VMEM_SPEC] * 4,
        out_specs=(VMEM_SPEC, VMEM_SPEC),
    )(k_cat, v_cat, wk_bd, wv_bd)


# ------------------------------------------------------------------ attention / message passing kernel
def _hgt_attention_kernel(src_ref, dst_ref, q_ref, k_ref, v_ref, ea_ref, o_ref,
                          qe_ref, ke_ref, ve_ref, lg_ref, me_ref, nmax_ref, nsum_ref,
                          *, num_edges, heads, head_dim):
    E, H, D = num_edges, heads, head_dim
    F = H * D
    inv_sqrt_d = 1.0 / math.sqrt(D)

    # constant 0/1 block matrices (exact): lane-sum per head [F,H], head->lane broadcast [H,F]
    f_of = jax.lax.broadcasted_iota(jnp.int32, (F, H), 0) // D
    h_of = jax.lax.broadcasted_iota(jnp.int32, (F, H), 1)
    sum_fh = (f_of == h_of).astype(jnp.float32)
    f_of2 = jax.lax.broadcasted_iota(jnp.int32, (H, F), 1) // D
    h_of2 = jax.lax.broadcasted_iota(jnp.int32, (H, F), 0)
    bcast_hf = (f_of2 == h_of2).astype(jnp.float32)

    # init accumulators
    o_ref[...] = jnp.zeros_like(o_ref)
    nmax_ref[...] = jnp.full_like(nmax_ref, -jnp.inf)
    nsum_ref[...] = jnp.zeros_like(nsum_ref)

    # 1) indexed gather of q_i / k_j / v_j rows onto edges (O(E*F), no dense one-hots).
    #    Destination rows are static (unrolled), only the source row index is dynamic.
    for e in range(E):                       # static trip count -> fully unrolled
        s = src_ref[e]
        d = dst_ref[e]
        qe_ref[pl.ds(e, 1), :] = q_ref[pl.ds(d, 1), :]
        ke_ref[pl.ds(e, 1), :] = k_ref[pl.ds(s, 1), :]
        ve_ref[pl.ds(e, 1), :] = v_ref[pl.ds(s, 1), :]

    # 2) attention logits for ALL heads at once: [E, H]
    lg_ref[...] = (jnp.dot(qe_ref[...] * ke_ref[...], sum_fh,
                           preferred_element_type=jnp.float32)
                   * ea_ref[...] * inv_sqrt_d)

    # 3) segment max over destination nodes (sequential read-modify-write)
    def seg_max(e, c):
        d = dst_ref[e]
        nmax_ref[pl.ds(d, 1), :] = jnp.maximum(nmax_ref[pl.ds(d, 1), :],
                                               lg_ref[pl.ds(e, 1), :])
        return c
    jax.lax.fori_loop(0, E, seg_max, 0)

    # 4) gather per-edge max (no aliasing -> unrolled), exponentiate in place
    for e in range(E):
        me_ref[pl.ds(e, 1), :] = nmax_ref[pl.ds(dst_ref[e], 1), :]
    lg_ref[...] = jnp.exp(lg_ref[...] - me_ref[...])                  # exp-weights [E, H]

    # 5) un-normalized messages in place: v_j * exp-weight (head -> lane broadcast on MXU)
    ve_ref[...] = ve_ref[...] * jnp.dot(lg_ref[...], bcast_hf,
                                        preferred_element_type=jnp.float32)   # [E, F]

    # 6) fused scatter-add of messages and exp-weights into destination rows
    def scatter_add(e, c):
        d = dst_ref[e]
        o_ref[pl.ds(d, 1), :] = o_ref[pl.ds(d, 1), :] + ve_ref[pl.ds(e, 1), :]
        nsum_ref[pl.ds(d, 1), :] = nsum_ref[pl.ds(d, 1), :] + lg_ref[pl.ds(e, 1), :]
        return c
    jax.lax.fori_loop(0, E, scatter_add, 0)

    # 7) softmax normalization once per destination node (identical to per-edge normalization;
    #    +1e-16 matches torch_geometric.utils.softmax)
    inv = 1.0 / (nsum_ref[...] + 1e-16)                               # [Nq, H]
    o_ref[...] = o_ref[...] * jnp.dot(inv, bcast_hf,
                                      preferred_element_type=jnp.float32)


def hgt_attention(q, k, v, src_idx, dst_idx, edge_attr, *, heads, head_dim):
    Nq, F = q.shape
    E = src_idx.shape[0]
    H = heads
    kern = functools.partial(_hgt_attention_kernel, num_edges=E, heads=H, head_dim=head_dim)
    return pl.pallas_call(
        kern,
        out_shape=jax.ShapeDtypeStruct((Nq, F), jnp.float32),
        in_specs=[SMEM_SPEC, SMEM_SPEC,                 # edge indices live in SMEM
                  VMEM_SPEC, VMEM_SPEC, VMEM_SPEC, VMEM_SPEC],
        out_specs=VMEM_SPEC,
        scratch_shapes=[
            pltpu.VMEM((E, F), jnp.float32),    # qe  (q_i per edge)
            pltpu.VMEM((E, F), jnp.float32),    # ke  (k_j per edge)
            pltpu.VMEM((E, F), jnp.float32),    # ve  (v_j per edge -> messages, in place)
            pltpu.VMEM((E, H), jnp.float32),    # logits -> exp weights, in place
            pltpu.VMEM((E, H), jnp.float32),    # per-edge gathered max
            pltpu.VMEM((Nq, H), jnp.float32),   # per-node running max
            pltpu.VMEM((Nq, H), jnp.float32),   # per-node exp-weight sum
        ],
    )(src_idx, dst_idx, q, k, v, edge_attr)


# ------------------------------------------------------------------ fused out_lin + skip + classifier
def _out_head_kernel(g_ref, h_ref, w_out_ref, b_out_ref, alpha_ref, w_cls_ref, b_cls_ref, y_ref):
    a = _mm(g_ref[...], w_out_ref[...]) + b_out_ref[...]
    alpha = alpha_ref[0, 0]
    x = alpha * a + (1.0 - alpha) * h_ref[...]          # gated skip connection
    y_ref[...] = _mm(x, w_cls_ref[...]) + b_cls_ref[...]


def out_head(g, h, w_out, b_out, alpha, w_cls, b_cls):
    C = g.shape[0]
    return pl.pallas_call(
        _out_head_kernel,
        out_shape=jax.ShapeDtypeStruct((C, w_cls.shape[1]), jnp.float32),
        in_specs=[VMEM_SPEC, VMEM_SPEC, VMEM_SPEC, VMEM_SPEC,
                  SMEM_SPEC, VMEM_SPEC, VMEM_SPEC],
        out_specs=VMEM_SPEC,
    )(g, h, w_out, b_out, alpha, w_cls, b_cls)


# ------------------------------------------------------------------ params
def init_params(key, x_dict, metadata, hidden, heads, num_classes):
    node_types, edge_types = metadata
    F = hidden
    D = F // heads
    num_et = len(edge_types)

    keys = iter(jax.random.split(key, 64))

    def nrm(shape, scale=0.1):
        return scale * jax.random.normal(next(keys), shape, jnp.float32)

    params = {
        # HGT.forward creates a fresh Linear(x.size(0), hidden) per node type per call;
        # we materialize them deterministically here.
        "in_lin": {t: (nrm((x_dict[t].shape[0], hidden)), nrm((1, hidden))) for t in node_types},
        "kqv": {t: (nrm((hidden, 3 * F)), nrm((1, 3 * F))) for t in node_types},
        "out_lin": {t: (nrm((F, F)), nrm((1, F))) for t in node_types},
        "k_rel": nrm((heads * num_et, D, D)),
        "v_rel": nrm((heads * num_et, D, D)),
        "skip": {t: jnp.ones((), jnp.float32) for t in node_types},             # ones() init
        "p_rel": {et: jnp.ones((1, heads), jnp.float32) for et in edge_types},  # ones() init
        "classifier": (nrm((hidden, num_classes)), nrm((1, num_classes))),
    }
    return params


# ------------------------------------------------------------------ forward
def hgt_forward(params, x_dict, edge_index_dict, metadata, hidden, heads):
    node_types, edge_types = metadata
    F, H = hidden, heads
    D = F // H
    num_et = len(edge_types)
    et_index = {et: i for i, et in enumerate(edge_types)}

    # ---- fused input transform + kqv projection (one kernel per node type)
    h_dict, kqv_dict = {}, {}
    for t in node_types:
        w_in, b_in = params["in_lin"][t]
        w_kqv, b_kqv = params["kqv"][t]
        h_dict[t], kqv_dict[t] = in_kqv(x_dict[t].T, w_in, b_in, w_kqv, b_kqv)

    k_dict, q_dict, v_dict = {}, {}, {}
    for t in node_types:
        kqv = kqv_dict[t]
        k_dict[t] = kqv[:, :F]          # [N_t, F] == [N_t, H, D] row-major
        q_dict[t] = kqv[:, F:2 * F]
        v_dict[t] = kqv[:, 2 * F:]

    # _cat(q_dict)
    q = jnp.concatenate([q_dict[t] for t in node_types], axis=0)    # [Nq, F]
    dst_offset, c = {}, 0
    for t in node_types:
        dst_offset[t] = c
        c += q_dict[t].shape[0]

    # _construct_src_node_feat: concat per edge type + typed relation transform
    ks, vs, groups = [], [], []
    row = 0
    for et in edge_index_dict:
        src = et[0]
        n = k_dict[src].shape[0]
        ks.append(k_dict[src])
        vs.append(v_dict[src])
        groups.append((row, n, et_index[et]))    # static (row_start, row_count, edge_type_id)
        row += n
    k_cat = jnp.concatenate(ks, axis=0)          # [Ns, F]
    v_cat = jnp.concatenate(vs, axis=0)

    wk_bd = block_diag_rel_weights(params["k_rel"], heads=H, num_et=num_et, head_dim=D)
    wv_bd = block_diag_rel_weights(params["v_rel"], heads=H, num_et=num_et, head_dim=D)
    k, v = rel_transform(k_cat, v_cat, wk_bd, wv_bd, groups=groups)

    # raw (un-offset) edge index, exactly as the reference forward passes to propagate()
    src_idx = jnp.concatenate([edge_index_dict[et][0] for et in edge_index_dict]).astype(jnp.int32)
    dst_idx = jnp.concatenate([edge_index_dict[et][1] for et in edge_index_dict]).astype(jnp.int32)
    edge_attr = jnp.concatenate(
        [jnp.broadcast_to(params["p_rel"][et], (edge_index_dict[et].shape[1], H))
         for et in edge_index_dict], axis=0)     # [E, H]

    out = hgt_attention(q, k, v, src_idx, dst_idx, edge_attr, heads=H, head_dim=D)  # [Nq, F]

    # ---- fused out_lin + gated skip + classifier per destination node type
    dst_node_types = set(et[-1] for et in edge_types)
    wc, bc = params["classifier"]
    result = {}
    for t, start in dst_offset.items():
        if t not in dst_node_types:
            continue
        o = out[start:start + q_dict[t].shape[0]]
        # TODO(synk): exact (erf) GELU kept in the XLA wrapper; erf lowering inside Mosaic is
        #             not guaranteed, everything downstream is fused in one kernel.
        g = jax.nn.gelu(o, approximate=False)
        w_out, b_out = params["out_lin"][t]
        alpha = jax.nn.sigmoid(params["skip"][t]).reshape(1, 1)
        # TODO(synk): reference calls nn.Linear on the whole dict (would raise in torch);
        #             applied per node type instead (same deliberate deviation as before).
        result[t] = out_head(g, h_dict[t], w_out, b_out, alpha, wc, bc)
    return result


# ------------------------------------------------------------------ main
if __name__ == "__main__":
    node_types = ["a", "b"]
    edge_types = [("a", "to", "b"), ("b", "rev", "a")]
    metadata = (node_types, edge_types)
    hidden, heads, num_classes = 32, 2, 3

    key = jax.random.PRNGKey(0)
    kx1, kx2, ke1, ke2, kp = jax.random.split(key, 5)

    x_dict = {
        "a": jax.random.normal(kx1, (6, 10), jnp.float32),   # [N_a=6, F_a=10]
        "b": jax.random.normal(kx2, (5, 12), jnp.float32),   # [N_b=5, F_b=12]
    }
    edge_index_dict = {
        ("a", "to", "b"): jnp.stack([
            jax.random.randint(ke1, (7,), 0, 6),
            jax.random.randint(jax.random.fold_in(ke1, 1), (7,), 0, 5),
        ]).astype(jnp.int32),
        ("b", "rev", "a"): jnp.stack([
            jax.random.randint(ke2, (9,), 0, 5),
            jax.random.randint(jax.random.fold_in(ke2, 1), (9,), 0, 6),
        ]).astype(jnp.int32),
    }

    params = init_params(kp, x_dict, metadata, hidden, heads, num_classes)
    out = hgt_forward(params, x_dict, edge_index_dict, metadata, hidden, heads)
    out = jax.block_until_ready(out)

    assert out["a"].shape == (10, num_classes)
    assert out["b"].shape == (12, num_classes)
    assert all(bool(jnp.all(jnp.isfinite(v))) for v in out.values())
    print("KERNEL_OK")
</pallas_src>

<mosaic_0001>
module attributes {stable_mosaic.version = 11 : i64} {
  func.func @_in_kqv_kernel(%arg0: memref<10x6xf32, #tpu.memory_space<vmem>>, %arg1: memref<6x32xf32, #tpu.memory_space<vmem>>, %arg2: memref<1x32xf32, #tpu.memory_space<vmem>>, %arg3: memref<32x96xf32, #tpu.memory_space<vmem>>, %arg4: memref<1x96xf32, #tpu.memory_space<vmem>>, %arg5: memref<10x32xf32, #tpu.memory_space<vmem>>, %arg6: memref<10x96xf32, #tpu.memory_space<vmem>>) attributes {dimension_semantics = [], scalar_prefetch = 0 : i64, scratch_operands = 0 : i64, tpu.core_type = #tpu.core_type<tc>} {
    %c0 = arith.constant 0 : index
    %c0_0 = arith.constant 0 : index
    %0 = vector.load %arg0[%c0, %c0_0] : memref<10x6xf32, #tpu.memory_space<vmem>>, vector<10x6xf32>
    %c0_1 = arith.constant 0 : index
    %c0_2 = arith.constant 0 : index
    %1 = vector.load %arg1[%c0_1, %c0_2] : memref<6x32xf32, #tpu.memory_space<vmem>>, vector<6x32xf32>
    %2 = arith.truncf %0 : vector<10x6xf32> to vector<10x6xbf16>
    %3 = arith.truncf %1 : vector<6x32xf32> to vector<6x32xbf16>
    %cst = arith.constant dense<0.000000e+00> : vector<10x32xf32>
    %4 = tpu.matmul %2, %3, %cst {dimension_numbers = #tpu.dot_dimension_numbers<[1], [0], [0], [1], [0, 0, 1, 1], [], []>} : vector<10x6xbf16>, vector<6x32xbf16>, vector<10x32xf32> -> vector<10x32xf32>
    %c0_3 = arith.constant 0 : index
    %c0_4 = arith.constant 0 : index
    %5 = vector.load %arg2[%c0_3, %c0_4] : memref<1x32xf32, #tpu.memory_space<vmem>>, vector<1x32xf32>
    %6 = vector.broadcast %5 : vector<1x32xf32> to vector<10x32xf32>
    %7 = arith.addf %4, %6 : vector<10x32xf32>
    %cst_5 = arith.constant 0.000000e+00 : f32
    %8 = vector.broadcast %cst_5 : f32 to vector<10x32xf32>
    %9 = arith.maximumf %7, %8 : vector<10x32xf32>
    %c0_6 = arith.constant 0 : index
    %c0_7 = arith.constant 0 : index
    %10 = vector.load %arg5[%c0_6, %c0_7] : memref<10x32xf32, #tpu.memory_space<vmem>>, vector<10x32xf32>
    tpu.vector_store %arg5[%c0_6, %c0_7], %9 {strides = array<i32>} : memref<10x32xf32, #tpu.memory_space<vmem>>, vector<10x32xf32>,
    %c0_8 = arith.constant 0 : index
    %c0_9 = arith.constant 0 : index
    %11 = vector.load %arg3[%c0_8, %c0_9] : memref<32x96xf32, #tpu.memory_space<vmem>>, vector<32x96xf32>
    %12 = arith.truncf %9 : vector<10x32xf32> to vector<10x32xbf16>
    %13 = arith.truncf %11 : vector<32x96xf32> to vector<32x96xbf16>
    %cst_10 = arith.constant dense<0.000000e+00> : vector<10x96xf32>
    %14 = tpu.matmul %12, %13, %cst_10 {dimension_numbers = #tpu.dot_dimension_numbers<[1], [0], [0], [1], [0, 0, 1, 1], [], []>} : vector<10x32xbf16>, vector<32x96xbf16>, vector<10x96xf32> -> vector<10x96xf32>
    %c0_11 = arith.constant 0 : index
    %c0_12 = arith.constant 0 : index
    %15 = vector.load %arg4[%c0_11, %c0_12] : memref<1x96xf32, #tpu.memory_space<vmem>>, vector<1x96xf32>
    %16 = vector.broadcast %15 : vector<1x96xf32> to vector<10x96xf32>
    %17 = arith.addf %14, %16 : vector<10x96xf32>
    %c0_13 = arith.constant 0 : index
    %c0_14 = arith.constant 0 : index
    %18 = vector.load %arg6[%c0_13, %c0_14] : memref<10x96xf32, #tpu.memory_space<vmem>>, vector<10x96xf32>
    tpu.vector_store %arg6[%c0_13, %c0_14], %17 {strides = array<i32>} : memref<10x96xf32, #tpu.memory_space<vmem>>, vector<10x96xf32>,
    return
  }
}

</mosaic_0001>

<bundles_post_ra>
// kernel: tpu_custom_call.1
= control target key start
LH: loop header
LB: loop body
LE: loop exit
PB: predicated region body
PF: predicated region fallthrough
CT: control target
= control target key end

     0   :  { %12 = vsyncpa [#allocation3], 0  ;;  %s409_s0 = inlined_call_operand.vmem [shape: f32[10,6], index: 0, kind: input, shape index: {}]   ;;  %s410_s1 = inlined_call_operand.hbm [shape: f32[6,32], index: 1, kind: input, shape index: {}]   ;;  %s411_s2 = inlined_call_operand.vmem [shape: f32[1,32], index: 2, kind: input, shape index: {}]   ;;  %s412_s3 = inlined_call_operand.vmem [shape: f32[32,96], index: 3, kind: input, shape index: {}]   ;;  %s413_s4 = inlined_call_operand.vmem [shape: f32[1,96], index: 4, kind: input, shape index: {}]   ;;  %s414_s5 = inlined_call_operand.hbm [shape: f32[10,32], index: 5, kind: output, shape index: {0}]   ;;  %s415_s6 = inlined_call_operand.hbm [shape: f32[10,96], index: 6, kind: output, shape index: {1}]  }
   0x1   :  { %13 = vsyncpa [#allocation4], 0 }
   0x2   :  { %14 = vsyncpa [#allocation7], 0  ;;  %s301_s21 = smov [#allocation2]   ;;  %s229_s25 = scalar_lea.hbm %s410_s1, 128 }
   0x3   :  { %s23_s22 = sshll.u32 %s301_s21, 4  ;;  %p230_p0 = scmp.ne.s32.totalorder %s410_s1, %s229_s25  ;;  %s24_s22 = int_to_ptr.vmem [resolvable:$true] %s23_s22 }
   0x4   :  { %p233_p1 = scmp.lt.u32.totalorder %s229_s25, %s410_s1 }
   0x6   :  { %p235_p2 = pnand %p233_p1, %p230_p0 }
   0x8   :  { %238 = shalt.err (!%p235_p2)
}
   0x9   :  { %s239_s30 = scalar_lea.vmem %s24_s22, 128  ;;  %p244_p4 = scmp.lt.s32.totalorder %s24_s22, %s24_s22 }
   0xa   :  { %p240_p3 = scmp.ne.s32.totalorder %s24_s22, %s239_s30  ;;  %p245_p5 = scmp.lt.s32.totalorder %s239_s30, %s239_s30 }
   0xc   :  { %p246_p6 = por %p245_p5, %p244_p4 }
   0xe   :  { %p247_p7 = pnand %p246_p6, %p240_p3 }
  0x10   :  { %250 = shalt.err (!%p247_p7)
}
  0x11   :  { %26 = dma.hbm_to_vmem [thread:$0]  %s410_s1, 128, %s24_s22, [#allocation3]  }
  0x12   :  { %295 = dma.done.wait [#allocation3], 128  }
  0x13   :  { %296 = vsyncadd [#allocation3], 4294967168  ;;  %v302_v0 = vmov 0.0   ;;  %vm303_vm0 = vmmov 0   ;;  %v39_v1 = vld [vmem:[#allocation2] sm:$0x3f] }
  0x14   :  { %208 = vmatprep.subr.bf16.mxu0 %v302_v0  ;;  %210 = vmatprep.mubr.msk.bf16.mxu0 %vm303_vm0, %v302_v0  ;;  %vm53_vm1 = vcmask 1042432   ;;  %v37_v2 = vld [vmem:[%s409_s0] sm:$0xff]  ;;  %v38_v3 = vld [vmem:[%s409_s0 + $0x8] sm:$0x3]  ;;  %v41_v4 = vpack.c.bf16 %v39_v1, %v39_v1  ;;  %vm49_vm2 = vcmask 48128   ;;  %v106_v10 = vld [vmem:[%s412_s3 + $0x10] sm:$0xff] }
  0x15   :  { %214 = vmatprep.subr.bf16.mxu1 %v302_v0  ;;  %218 = vmatprep.mubr.msk.bf16.mxu1 %vm303_vm0, %v302_v0  ;;  %v40_v6 = vpack.c.bf16 %v38_v3, %v37_v2  ;;  %v104_v7 = vld [vmem:[%s412_s3] sm:$0xff]  ;;  %v105_v8 = vld [vmem:[%s412_s3 + $0x8] sm:$0xff]  ;;  %v107_v11 = vld [vmem:[%s412_s3 + $0x18] sm:$0xff]  ;;  %vm100_vm3 = vcmask 261120   ;;  %vm102_vm4 = vcmask 254976   ;;  %s304_s3 = smov [#allocation5]  }
  0x16   :  { %v55_v5 = vsel %vm53_vm1, %v41_v4, 0  ;;  %v109_v9 = vpack.c.bf16 %v105_v8, %v104_v7  ;;  %v110_v12 = vpack.c.bf16 %v107_v11, %v106_v10  ;;  %v199_v13 = vld [vmem:[%s411_s2] ss:$0 sm:$0xff]  ;;  %s171_s21 = sshll.u32 %s304_s3, 4  ;;  %s172_s21 = int_to_ptr.vmem [resolvable:$true] %s171_s21 }
  0x17   :  { %209 = vmatpush3.bf16.msra.mxu0 %v55_v5  ;;  %s251_s22 = scalar_lea.vmem %s172_s21, 256  ;;  %p256_p9 = scmp.lt.s32.totalorder %s172_s21, %s172_s21 }
  0x18   :  { %215 = vmatpush3.bf16.msra.mxu1 %v109_v9  ;;  %p252_p8 = scmp.ne.s32.totalorder %s172_s21, %s251_s22  ;;  %p257_p10 = scmp.lt.s32.totalorder %s251_s22, %s251_s22 }
  0x19   :  { %216 = vmatprep.subr.bf16.mxu1 %v302_v0 }
  0x1a   :  { %211 = vmatmul.mubr.msk.bf16.vlgmr.msra.gmra.mrb[0].mxu0 %vm49_vm2, %v40_v6  ;;  %p258_p11 = por %p257_p10, %p256_p9 }
  0x1c   :  { %217 = vmatpush3.bf16.msra.mxu1 %v110_v12  ;;  %p259_p12 = pnand %p258_p11, %p252_p8 }
  0xed   :  { %v91_v14 = vpop.f32.mrb[0].mxu0 }
  0xee   :  { %v92_v15 = vadd.f32 %v199_v13, %v91_v14  ;;  %v212_v16 = vpop.f32.mrb[1].mxu0 }
  0xef   :  { %v94_v17 = vpop.f32.mrb[2].mxu0 }
  0xf0   :  { %v98_v18 = vmax.f32 %v92_v15, 0.0  ;;  %v95_v19 = vadd.f32 %v199_v13, %v94_v17  ;;  %v213_v20 = vpop.f32.mrb[3].mxu0 }
  0xf2   :  { %v99_v21 = vmax.f32 %v95_v19, 0.0  ;;  %101 = vst.msk [vmem:[#allocation5] sm:$0xff] %vm100_vm3, %v98_v18 }
  0xf4   :  { %103 = vst.msk [vmem:[#allocation5 + $0x8] sm:$0x3] %vm102_vm4, %v99_v21  ;;  %v108_v22 = vpack.c.bf16 %v99_v21, %v98_v18 }
  0xf6   :  { %219 = vmatmul.mubr.msk.bf16.vlgmr.msra.gmra.mrb[0].mxu1 %vm100_vm3, %v108_v22 }
  0xf7   :  { %262 = shalt.err (!%p259_p12)
}
  0xf8   :  { %s263_s24 = scalar_lea.hbm %s414_s5, 256 }
  0xf9   :  { %p264_p13 = scmp.ne.s32.totalorder %s414_s5, %s263_s24  ;;  %p267_p0 = scmp.lt.u32.totalorder %s263_s24, %s414_s5 }
  0xfb   :  { %p269_p1 = pnand %p267_p0, %p264_p13 }
  0xfd   :  { %272 = shalt.err (!%p269_p1)
}
  0xfe   :  { %s305_s29 = smov 128   ;;  %s306_s30 = smov 8   ;;  %v201_v23 = vld [vmem:[%s413_s4] ss:$0 sm:$0xff]  ;;  %vm162_vm5 = vcmask 785408   ;;  %vm164_vm6 = vcmask 779264  }
  0xff   :  { %177 = dma.vmem_to_hbm [thread:$0]  %s172_s21, 256, %s414_s5, [#allocation4], %s305_s29, %s305_s29, %s306_s30  }
 0x100   :  { %s307_s11 = smov [#allocation6]  }
 0x101   :  { %s183_s12 = sshll.u32 %s307_s11, 4  ;;  %s184_s12 = int_to_ptr.vmem [resolvable:$true] %s183_s12 }
 0x102   :  { %s273_s1 = scalar_lea.vmem %s184_s12, 256  ;;  %p278_p3 = scmp.lt.s32.totalorder %s184_s12, %s184_s12 }
 0x103   :  { %p274_p2 = scmp.ne.s32.totalorder %s184_s12, %s273_s1  ;;  %p279_p4 = scmp.lt.s32.totalorder %s273_s1, %s273_s1 }
 0x105   :  { %p280_p5 = por %p279_p4, %p278_p3 }
 0x107   :  { %p281_p6 = pnand %p280_p5, %p274_p2 }
 0x1c9   :  { %v155_v24 = vpop.f32.mrb[0].mxu1 }
 0x1ca   :  { %v156_v25 = vadd.f32 %v201_v23, %v155_v24  ;;  %v220_v26 = vpop.f32.mrb[1].mxu1 }
 0x1cb   :  { %v158_v27 = vpop.f32.mrb[2].mxu1 }
 0x1cc   :  { %163 = vst.msk [vmem:[#allocation6] sm:$0xff] %vm162_vm5, %v156_v25  ;;  %v159_v28 = vadd.f32 %v201_v23, %v158_v27  ;;  %v221_v29 = vpop.f32.mrb[3].mxu1 }
 0x1ce   :  { %165 = vst.msk [vmem:[#allocation6 + $0x8] sm:$0x3] %vm164_vm6, %v159_v28 }
 0x1cf   :  { %284 = shalt.err (!%p281_p6)
}
 0x1d0   :  { %s285_s13 = scalar_lea.hbm %s415_s6, 256 }
 0x1d1   :  { %p286_p7 = scmp.ne.s32.totalorder %s415_s6, %s285_s13  ;;  %p289_p8 = scmp.lt.u32.totalorder %s285_s13, %s415_s6 }
 0x1d3   :  { %p291_p9 = pnand %p289_p8, %p286_p7 }
 0x1d5   :  { %294 = shalt.err (!%p291_p9)
}
 0x1d6   :  { %189 = dma.vmem_to_hbm [thread:$0]  %s184_s12, 256, %s415_s6, [#allocation7], %s305_s29, %s305_s29, %s306_s30  }
 0x1d7   :  { %297 = dma.done.wait [#allocation4], 256  }
 0x1d8   :  { %298 = vsyncadd [#allocation4], 4294967040 }
 0x1d9   :  { %299 = dma.done.wait [#allocation7], 256  }
 0x1da   :  { %300 = vsyncadd [#allocation7], 4294967040 }
 0x1db   :  { %196 = vsyncpa [#allocation3], 1 }
 0x1dc   :  { %197 = vsyncpa [#allocation4], 1 }
 0x1dd   :  { %198 = vsyncpa [#allocation7], 1 }

</bundles_post_ra>
